<compile_context>
chip_gen: v5e
topology: v5e:2x2
jax: 0.10.0
libtpu: 0.0.40
codegen_flags: <defaults>
</compile_context>

<pallas_src>
import functools

import jax
import jax.numpy as jnp
from jax.experimental import pallas as pl
from jax.experimental.pallas import tpu as pltpu


def _round_up(x, m):
    return (x + m - 1) // m * m


def _lane_fold(C, M):
    """Fold factor so the lane (last) dim is a full 128 wide when C < 128."""
    if C < 128 and 128 % C == 0 and M % (128 // C) == 0:
        return 128 // C
    return 1


# --------------------------------------------------------------------------
# Pallas kernels
# --------------------------------------------------------------------------

def _conv_mm_stats_kernel(a_ref, b_ref, o_ref, stats_ref):
    """bf16 MXU matmul tile + fused per-channel sum / sum-of-squares.

    grid = (N tiles, M tiles); stats accumulate across the innermost M axis
    (output block index constant along it -> VMEM-resident accumulator).
    """
    i = pl.program_id(1)  # M-tile index

    @pl.when(i == 0)
    def _():
        stats_ref[...] = jnp.zeros_like(stats_ref)

    acc = jnp.dot(a_ref[...], b_ref[...], preferred_element_type=jnp.float32)
    o_ref[...] = acc

    s = jnp.sum(acc, axis=0, keepdims=True)
    ss = jnp.sum(acc * acc, axis=0, keepdims=True)
    stats_ref[...] += jnp.concatenate([s, ss], axis=0)


def conv_matmul_stats(a_bf16, b_bf16):
    """(M,K)bf16 @ (K,N)bf16 -> (M,N)f32 plus per-column (sum, sumsq)."""
    M, K = a_bf16.shape
    _, N = b_bf16.shape
    tm = min(128, _round_up(M, 8))            # right-size M tile to real M
    tn = min(256, _round_up(N, 128))          # wide N tile for 256x256 MXU
    Mp = _round_up(M, tm)
    Np = _round_up(N, tn)
    Kp = _round_up(K, 128)
    a_p = jnp.pad(a_bf16, ((0, Mp - M), (0, Kp - K)))
    b_p = jnp.pad(b_bf16, ((0, Kp - K), (0, Np - N)))

    out, stats = pl.pallas_call(
        _conv_mm_stats_kernel,
        out_shape=(jax.ShapeDtypeStruct((Mp, Np), jnp.float32),
                   jax.ShapeDtypeStruct((2, Np), jnp.float32)),
        grid_spec=pltpu.PrefetchScalarGridSpec(
            num_scalar_prefetch=0,
            grid=(Np // tn, Mp // tm),
            in_specs=[
                pl.BlockSpec((tm, Kp), lambda j, i: (i, 0)),
                pl.BlockSpec((Kp, tn), lambda j, i: (0, j)),
            ],
            out_specs=[
                pl.BlockSpec((tm, tn), lambda j, i: (i, j)),
                pl.BlockSpec((2, tn), lambda j, i: (0, j)),
            ],
        ),
        compiler_params=pltpu.CompilerParams(
            dimension_semantics=("parallel", "arbitrary")),
    )(a_p, b_p)
    # Padded (zero) rows contribute 0 to sum/sumsq; caller divides by true M.
    return out[:M, :N], stats[0, :N], stats[1, :N]


def _affine_kernel(x_ref, s_ref, b_ref, o_ref, *, relu):
    y = x_ref[...] * s_ref[...] + b_ref[...]
    if relu:
        y = jnp.maximum(y, 0.0)
    o_ref[...] = y


def _affine_res_kernel(x_ref, r_ref, s_ref, b_ref, o_ref, *, relu):
    y = x_ref[...] * s_ref[...] + b_ref[...] + r_ref[...]
    if relu:
        y = jnp.maximum(y, 0.0)
    o_ref[...] = y


def affine(x2d, scale, shift, residual=None, relu=False):
    """Per-channel scale*x + shift (+ residual) (+ ReLU) on an (M, C) slab.

    C < 128 slabs are folded to a lane-dense 128-wide layout (no masked vst).
    """
    M, C = x2d.shape
    f = _lane_fold(C, M)
    Mf, Cf = M // f, C * f
    x2 = x2d.reshape(Mf, Cf)
    s = jnp.tile(scale.astype(jnp.float32), f).reshape(1, Cf)
    b = jnp.tile(shift.astype(jnp.float32), f).reshape(1, Cf)
    tm = min(128, _round_up(Mf, 8))
    Mp = _round_up(Mf, tm)
    x_p = jnp.pad(x2, ((0, Mp - Mf), (0, 0)))
    row_spec = pl.BlockSpec((tm, Cf), lambda i: (i, 0))
    vec_spec = pl.BlockSpec((1, Cf), lambda i: (0, 0))  # constant block -> fetched once
    if residual is None:
        out = pl.pallas_call(
            functools.partial(_affine_kernel, relu=relu),
            out_shape=jax.ShapeDtypeStruct((Mp, Cf), jnp.float32),
            grid_spec=pltpu.PrefetchScalarGridSpec(
                num_scalar_prefetch=0, grid=(Mp // tm,),
                in_specs=[row_spec, vec_spec, vec_spec],
                out_specs=row_spec),
            compiler_params=pltpu.CompilerParams(
                dimension_semantics=("parallel",)),
        )(x_p, s, b)
    else:
        r_p = jnp.pad(residual.reshape(Mf, Cf), ((0, Mp - Mf), (0, 0)))
        out = pl.pallas_call(
            functools.partial(_affine_res_kernel, relu=relu),
            out_shape=jax.ShapeDtypeStruct((Mp, Cf), jnp.float32),
            grid_spec=pltpu.PrefetchScalarGridSpec(
                num_scalar_prefetch=0, grid=(Mp // tm,),
                in_specs=[row_spec, row_spec, vec_spec, vec_spec],
                out_specs=row_spec),
            compiler_params=pltpu.CompilerParams(
                dimension_semantics=("parallel",)),
        )(x_p, r_p, s, b)
    return out[:Mf].reshape(M, C)


def _max_reduce_kernel(*refs):
    o_ref = refs[-1]
    m = refs[0][...]
    for r in refs[1:-1]:
        m = jnp.maximum(m, r[...])
    o_ref[...] = m


def maxpool_3x3_s2_p1(x_nhwc):
    """nn.MaxPool2d(3, stride=2, padding=1): 9 shifted views -> one Pallas max."""
    N, H, W, C = x_nhwc.shape
    Ho = (H + 2 - 3) // 2 + 1
    Wo = (W + 2 - 3) // 2 + 1
    M = N * Ho * Wo
    xp = jnp.pad(x_nhwc, ((0, 0), (1, 1), (1, 1), (0, 0)),
                 constant_values=-jnp.inf)
    f = _lane_fold(C, M)
    Mf, Cf = M // f, C * f
    tm = min(128, _round_up(Mf, 8))
    Mp = _round_up(Mf, tm)
    views = []
    for i in range(3):
        for j in range(3):
            v = xp[:, i:i + 2 * (Ho - 1) + 1:2,
                   j:j + 2 * (Wo - 1) + 1:2, :].reshape(Mf, Cf)
            views.append(jnp.pad(v, ((0, Mp - Mf), (0, 0)),
                                 constant_values=-jnp.inf))
    spec = pl.BlockSpec((tm, Cf), lambda i: (i, 0))
    out = pl.pallas_call(
        _max_reduce_kernel,
        out_shape=jax.ShapeDtypeStruct((Mp, Cf), jnp.float32),
        grid_spec=pltpu.PrefetchScalarGridSpec(
            num_scalar_prefetch=0, grid=(Mp // tm,),
            in_specs=[spec] * 9,
            out_specs=spec),
        compiler_params=pltpu.CompilerParams(
            dimension_semantics=("parallel",)),
    )(*views)
    return out[:Mf].reshape(N, Ho, Wo, C)


def _avgpool_fc_kernel(x_ref, w_ref, b_ref, o_ref, *, inv_hw):
    pooled = jnp.sum(x_ref[...], axis=1) * inv_hw              # (Nb, C) f32
    acc = jnp.dot(pooled.astype(jnp.bfloat16), w_ref[...],
                  preferred_element_type=jnp.float32)
    o_ref[...] = acc + b_ref[...]


def avgpool_fc(x_nhwc, fc_w, fc_b):
    """AdaptiveAvgPool2d((1,1)) + Linear fused into one Pallas kernel."""
    N, H, W, C = x_nhwc.shape
    K, num_classes = fc_w.shape
    Np = _round_up(num_classes, 128)
    Nb = _round_up(N, 8)
    x3 = jnp.pad(x_nhwc.reshape(N, H * W, C), ((0, Nb - N), (0, 0), (0, 0)))
    w_p = jnp.pad(fc_w.astype(jnp.bfloat16), ((0, 0), (0, Np - num_classes)))
    b_p = jnp.pad(fc_b.astype(jnp.float32), (0, Np - num_classes)).reshape(1, Np)
    out = pl.pallas_call(
        functools.partial(_avgpool_fc_kernel, inv_hw=1.0 / float(H * W)),
        out_shape=jax.ShapeDtypeStruct((Nb, Np), jnp.float32),
        grid_spec=pltpu.PrefetchScalarGridSpec(
            num_scalar_prefetch=0, grid=(1,),
            in_specs=[pl.BlockSpec((Nb, H * W, C), lambda i: (0, 0, 0)),
                      pl.BlockSpec((K, Np), lambda i: (0, 0)),
                      pl.BlockSpec((1, Np), lambda i: (0, 0))],
            out_specs=pl.BlockSpec((Nb, Np), lambda i: (0, 0))),
        compiler_params=pltpu.CompilerParams(
            dimension_semantics=("arbitrary",)),
    )(x3, w_p, b_p)
    return out[:N, :num_classes]


# --------------------------------------------------------------------------
# Glue: conv (im2col in bf16) + BN-from-fused-stats, blocks, full forward
# --------------------------------------------------------------------------

def conv2d_bn_input(x_nhwc, w_oihw, stride, pad):
    """Conv2d (bias=False) via bf16 im2col + Pallas MXU matmul with fused
    per-channel statistics for the following BatchNorm.

    Returns (y2d (M, Cout) f32, sum_c, sumsq_c, out_shape_nhwc).
    """
    N, H, W, Cin = x_nhwc.shape
    Cout, _, kh, kw = w_oihw.shape
    Ho = (H + 2 * pad - kh) // stride + 1
    Wo = (W + 2 * pad - kw) // stride + 1
    xp = jnp.pad(x_nhwc, ((0, 0), (pad, pad), (pad, pad), (0, 0)))
    cols = []
    for i in range(kh):
        for j in range(kw):
            cols.append(xp[:, i:i + stride * (Ho - 1) + 1:stride,
                           j:j + stride * (Wo - 1) + 1:stride, :])
    # TODO(synk): implicit im2col inside the matmul kernel (Element-offset or
    # manual-DMA shifted windows) would avoid materializing this patch matrix
    # entirely; here it stays in XLA but is built directly in bf16 (half the
    # previous footprint) and the M dimension is no longer padded to 128.
    patches = jnp.concatenate(cols, axis=-1).reshape(
        N * Ho * Wo, kh * kw * Cin).astype(jnp.bfloat16)
    w2d = jnp.transpose(w_oihw, (2, 3, 1, 0)).reshape(
        kh * kw * Cin, Cout).astype(jnp.bfloat16)
    y2d, s, ss = conv_matmul_stats(patches, w2d)
    return y2d, s, ss, (N, Ho, Wo, Cout)


def bn_affine(y2d, s, ss, gamma, beta, residual2d=None, relu=False, eps=1e-5):
    """BatchNorm2d (training-mode batch stats) from fused sums + affine kernel."""
    count = float(y2d.shape[0])
    mean = s / count
    var = jnp.maximum(ss / count - mean * mean, 0.0)  # biased var, clamped >= 0
    scale = gamma * jax.lax.rsqrt(var + eps)
    shift = beta - mean * scale
    return affine(y2d, scale, shift, residual=residual2d, relu=relu)


def basic_block(x_nhwc, p, stride):
    N, H, W, Cin = x_nhwc.shape
    y1, s1, ss1, (n, ho, wo, c) = conv2d_bn_input(x_nhwc, p['conv1_w'], stride, 1)
    out = bn_affine(y1, s1, ss1, p['bn1_g'], p['bn1_b'], relu=True)
    out = out.reshape(n, ho, wo, c)

    y2, s2, ss2, (n2, ho2, wo2, c2) = conv2d_bn_input(out, p['conv2_w'], 1, 1)

    if 'ds_w' in p:
        yd, sd, ssd, _ = conv2d_bn_input(x_nhwc, p['ds_w'], stride, 0)
        identity2d = bn_affine(yd, sd, ssd, p['ds_bn_g'], p['ds_bn_b'])
    else:
        identity2d = x_nhwc.reshape(N * H * W, Cin)

    out2d = bn_affine(y2, s2, ss2, p['bn2_g'], p['bn2_b'],
                      residual2d=identity2d, relu=True)
    return out2d.reshape(n2, ho2, wo2, c2)


def resnet18_forward(x_nchw, params):
    # layout: NCHW (PyTorch) input -> NHWC for all Pallas compute.
    x = jnp.transpose(x_nchw, (0, 2, 3, 1)).astype(jnp.float32)
    y, s, ss, (n, ho, wo, c) = conv2d_bn_input(x, params['conv1_w'], 2, 3)
    x = bn_affine(y, s, ss, params['bn1_g'], params['bn1_b'], relu=True)
    x = x.reshape(n, ho, wo, c)
    x = maxpool_3x3_s2_p1(x)
    for li, layer in enumerate(params['layers']):
        for bi, blk in enumerate(layer):
            stride = 2 if (li > 0 and bi == 0) else 1
            x = basic_block(x, blk, stride)
    logits = avgpool_fc(x, params['fc_w'], params['fc_b'])   # fused pool + FC
    return logits                                            # (N, num_classes)


# --------------------------------------------------------------------------
# Deterministic parameter init (resnet18 shapes; He-normal conv weights)
# --------------------------------------------------------------------------

def init_params(key, num_classes=10):
    keys = iter(jax.random.split(key, 64))

    def conv_w(cout, cin, k):
        fan_in = cin * k * k
        return (jax.random.normal(next(keys), (cout, cin, k, k), jnp.float32)
                * (2.0 / fan_in) ** 0.5)

    params = {
        'conv1_w': conv_w(64, 3, 7),
        'bn1_g': jnp.ones((64,), jnp.float32),
        'bn1_b': jnp.zeros((64,), jnp.float32),
    }
    layers = []
    cin = 64
    for li, cout in enumerate([64, 128, 256, 512]):
        blocks = []
        for bi in range(2):
            stride = 2 if (li > 0 and bi == 0) else 1
            blk_cin = cin if bi == 0 else cout
            blk = {
                'conv1_w': conv_w(cout, blk_cin, 3),
                'bn1_g': jnp.ones((cout,), jnp.float32),
                'bn1_b': jnp.zeros((cout,), jnp.float32),
                'conv2_w': conv_w(cout, cout, 3),
                'bn2_g': jnp.ones((cout,), jnp.float32),
                'bn2_b': jnp.zeros((cout,), jnp.float32),
            }
            if bi == 0 and (stride != 1 or blk_cin != cout):
                blk['ds_w'] = conv_w(cout, blk_cin, 1)
                blk['ds_bn_g'] = jnp.ones((cout,), jnp.float32)
                blk['ds_bn_b'] = jnp.zeros((cout,), jnp.float32)
            blocks.append(blk)
        layers.append(blocks)
        cin = cout
    params['layers'] = layers
    # torch fc weight is (num_classes, 512); stored transposed as (512, num_classes)
    params['fc_w'] = (jax.random.normal(next(keys), (512, num_classes),
                                        jnp.float32) * 0.05)
    params['fc_b'] = jnp.zeros((num_classes,), jnp.float32)
    return params


if __name__ == "__main__":
    key = jax.random.PRNGKey(0)
    pkey, xkey = jax.random.split(key)
    params = init_params(pkey, num_classes=10)
    # Small input consistent with resnet18: NCHW, 3 channels, 32x32 spatial.
    x = jax.random.normal(xkey, (2, 3, 32, 32), jnp.float32)
    logits = resnet18_forward(x, params)
    logits = jax.block_until_ready(logits)
    assert logits.shape == (2, 10), logits.shape
    assert bool(jnp.all(jnp.isfinite(logits)))
    print("KERNEL_OK")
</pallas_src>

<mosaic_0001>
module attributes {stable_mosaic.version = 11 : i64} {
  func.func @_conv_mm_stats_kernel(%arg0: i32, %arg1: i32, %arg2: memref<128x256xbf16, #tpu.memory_space<vmem>>, %arg3: memref<256x128xbf16, #tpu.memory_space<vmem>>, %arg4: memref<128x128xf32, #tpu.memory_space<vmem>>, %arg5: memref<2x128xf32, #tpu.memory_space<vmem>>) attributes {dimension_semantics = [#tpu.dimension_semantics<parallel>, #tpu.dimension_semantics<arbitrary>], iteration_bounds = array<i64: 1, 4>, scalar_prefetch = 0 : i64, scratch_operands = 0 : i64, tpu.core_type = #tpu.core_type<tc>, window_params = [{transform_indices = @transform_0, window_bounds = array<i64: 128, 256>}, {transform_indices = @transform_1, window_bounds = array<i64: 256, 128>}, {transform_indices = @transform_2, window_bounds = array<i64: 128, 128>}, {transform_indices = @transform_3, window_bounds = array<i64: 2, 128>}]} {
    %c0_i32 = arith.constant 0 : i32
    %0 = arith.cmpi eq, %arg1, %c0_i32 : i32
    %1 = arith.extui %0 : i1 to i32
    %c0_i32_0 = arith.constant 0 : i32
    %2 = arith.cmpi ne, %1, %c0_i32_0 : i32
    scf.if %2 {
      %cst_12 = arith.constant 0.000000e+00 : f32
      %16 = vector.broadcast %cst_12 : f32 to vector<2x128xf32>
      %c0_13 = arith.constant 0 : index
      %c0_14 = arith.constant 0 : index
      %17 = vector.load %arg5[%c0_13, %c0_14] : memref<2x128xf32, #tpu.memory_space<vmem>>, vector<2x128xf32>
      tpu.vector_store %arg5[%c0_13, %c0_14], %16 {strides = array<i32>} : memref<2x128xf32, #tpu.memory_space<vmem>>, vector<2x128xf32>,
    } else {
    }
    %c0 = arith.constant 0 : index
    %c0_1 = arith.constant 0 : index
    %3 = vector.load %arg2[%c0, %c0_1] : memref<128x256xbf16, #tpu.memory_space<vmem>>, vector<128x256xbf16>
    %c0_2 = arith.constant 0 : index
    %c0_3 = arith.constant 0 : index
    %4 = vector.load %arg3[%c0_2, %c0_3] : memref<256x128xbf16, #tpu.memory_space<vmem>>, vector<256x128xbf16>
    %cst = arith.constant dense<0.000000e+00> : vector<128x128xf32>
    %5 = tpu.matmul %3, %4, %cst {dimension_numbers = #tpu.dot_dimension_numbers<[1], [0], [0], [1], [0, 0, 1, 1], [], []>} : vector<128x256xbf16>, vector<256x128xbf16>, vector<128x128xf32> -> vector<128x128xf32>
    %c0_4 = arith.constant 0 : index
    %c0_5 = arith.constant 0 : index
    %6 = vector.load %arg4[%c0_4, %c0_5] : memref<128x128xf32, #tpu.memory_space<vmem>>, vector<128x128xf32>
    tpu.vector_store %arg4[%c0_4, %c0_5], %5 {strides = array<i32>} : memref<128x128xf32, #tpu.memory_space<vmem>>, vector<128x128xf32>,
    %cst_6 = arith.constant dense<0.000000e+00> : vector<128xf32>
    %7 = vector.multi_reduction <add>, %5, %cst_6 [0] : vector<128x128xf32> to vector<128xf32>
    %8 = vector.shape_cast %7 : vector<128xf32> to vector<1x128xf32>
    %9 = arith.mulf %5, %5 : vector<128x128xf32>
    %cst_7 = arith.constant dense<0.000000e+00> : vector<128xf32>
    %10 = vector.multi_reduction <add>, %9, %cst_7 [0] : vector<128x128xf32> to vector<128xf32>
    %11 = vector.shape_cast %10 : vector<128xf32> to vector<1x128xf32>
    %c0_8 = arith.constant 0 : index
    %c0_9 = arith.constant 0 : index
    %12 = vector.load %arg5[%c0_8, %c0_9] : memref<2x128xf32, #tpu.memory_space<vmem>>, vector<2x128xf32>
    %13 = tpu.concatenate %8, %11 in 0 : vector<1x128xf32>, vector<1x128xf32> -> vector<2x128xf32>
    %14 = arith.addf %12, %13 : vector<2x128xf32>
    %c0_10 = arith.constant 0 : index
    %c0_11 = arith.constant 0 : index
    %15 = vector.load %arg5[%c0_10, %c0_11] : memref<2x128xf32, #tpu.memory_space<vmem>>, vector<2x128xf32>
    tpu.vector_store %arg5[%c0_10, %c0_11], %14 {strides = array<i32>} : memref<2x128xf32, #tpu.memory_space<vmem>>, vector<2x128xf32>,
    return
  }
  func.func @transform_0(%arg0: i32, %arg1: i32) -> (i32, i32) {
    %c0_i32 = arith.constant 0 : i32
    %c0_i32_0 = arith.constant 0 : i32
    return %arg1, %c0_i32 : i32, i32
  }
  func.func @transform_1(%arg0: i32, %arg1: i32) -> (i32, i32) {
    %c0_i32 = arith.constant 0 : i32
    %c0_i32_0 = arith.constant 0 : i32
    return %c0_i32, %arg0 : i32, i32
  }
  func.func @transform_2(%arg0: i32, %arg1: i32) -> (i32, i32) {
    %c0_i32 = arith.constant 0 : i32
    return %arg1, %arg0 : i32, i32
  }
  func.func @transform_3(%arg0: i32, %arg1: i32) -> (i32, i32) {
    %c0_i32 = arith.constant 0 : i32
    %c0_i32_0 = arith.constant 0 : i32
    return %c0_i32, %arg0 : i32, i32
  }
}

</mosaic_0001>

<bundles_post_ra>
// kernel: tpu_custom_call.1
= control target key start
LH: loop header
LB: loop body
LE: loop exit
PB: predicated region body
PF: predicated region fallthrough
CT: control target
= control target key end

     0   :  { %s1527_s0 = inlined_call_operand.hbm [shape: bf16[512,256], index: 0, kind: input, shape index: {}]   ;;  %s1528_s1 = inlined_call_operand.hbm [shape: bf16[256,128], index: 1, kind: input, shape index: {}]   ;;  %s1529_s2 = inlined_call_operand.hbm [shape: f32[512,128], index: 2, kind: output, shape index: {0}]   ;;  %s1530_s3 = inlined_call_operand.hbm [shape: f32[2,128], index: 3, kind: output, shape index: {1}]  }
   0x1   :  { %1532 = sst [smem:[#allocation15_spill]] %s1528_s1 }
   0x2   :  { %9 = vsyncpa [#allocation3], 0 }
   0x3   :  { %11 = vsyncpa [#allocation3 + $0x1], 0 }
   0x4   :  { %12 = vsyncpa [#allocation6], 0 }
   0x5   :  { %13 = vsyncpa [#allocation4], 0 }
   0x6   :  { %15 = vsyncpa [#allocation4 + $0x1], 0 }
   0x7   :  { %16 = vsyncpa [#allocation9], 0  ;;  %s1278_s12 = smov 0   ;;  %s1280_s13 = smov 0  }
   0x8   :  { %s1282_s14 = smov 0   ;;  %s1284_s15 = smov 0  }
   0x9   :  { %s1286_s16 = smov 0   ;;  %s1288_s17 = smov 0  }
   0xa LB: > { %s782_s18 = sadd.s32 4294967295, %s1247_s17   ;;  %s783_s19 = sadd.s32 4294967294, %s1247_s17   ;;  %s1247_s17 = sphi %s1288_s17, %s22_s17   ;;  %s1243_s16 = sphi %s1286_s16, %s1547_s16   ;;  %s1239_s15 = sphi %s1284_s15, %s1546_s15   ;;  %s1235_s14 = sphi %s1282_s14, %s1545_s14   ;;  %s1231_s13 = sphi %s1280_s13, %s1544_s13   ;;  %s1227_s12 = sphi %s1278_s12, %s1543_s12  }
   0xb   : > { %p54_p0 = scmp.ne.s32.totalorder %s1231_s13, %s1227_s12  ;;  %p1312_p1 = scmp.eq.s32.totalorder %s782_s18, 0 }
   0xc   : > { %p1316_p2 = scmp.eq.s32.totalorder %s782_s18, 3  ;;  %p112_p3 = scmp.eq.s32.totalorder %s783_s19, 3 }
   0xd   : > { %p1322_p4 = por %p1312_p1, %p54_p0  ;;  %p784_p5 = scmp.ge.s32.totalorder %s1247_s17, 1 }
   0xe   : > { %p1327_p6 = por %p112_p3, %p54_p0  ;;  %p145_p7 = scmp.lt.s32.totalorder %s1247_s17, 5 }
   0xf   : > { %s1537_s1 = sld [smem:[#allocation15_spill]]  ;;  %s1249_s28 = smov [#allocation5]  }
  0x10   : > { %p1335_p8 = pnand %p784_p5, %p145_p7  ;;  %s160_s29 = sshll.u32 %s1249_s28, 4  ;;  %s161_s29 = int_to_ptr.vmem [resolvable:$true] %s160_s29 }
  0x11   : > { %s1250_s30 = smov 64   ;;  %s1251_s4 = smov 4  }
  0x12   : > { %p994_p9 = pneg %p1335_p8  ;;  %s31_s5 = sadd.s32 1, %s1243_s16 }
  0x13   : > { %p32_p11 = scmp.ge.s32.totalorder %s31_s5, 4  ;;  %s41_s6 = sadd.s32 1, %s1235_s14 }
  0x14   : > { %p995_p10 = pnand %p994_p9, %p1312_p1  ;;  %p48_p12 = scmp.ne.s32.totalorder %s1235_s14, %s1231_s13 }
  0x15   : > { %s158_s26 = sshll.u32 %s1537_s1, 4  ;;  %p49_p13 = scmp.eq.s32.totalorder %s1247_s17, 0  ;;  %s159_s26 = int_to_ptr.hbm [resolvable:$true] %s158_s26 }
  0x16   : > { %997 = dma.hbm_to_vmem [thread:$0]  (!%p995_p10), %s159_s26, 2048, %s161_s29, [#allocation6], %s1250_s30, %s1250_s30, %s1251_s4  }
  0x17   : > { %s1549_s5 = smov (%p32_p11, %s31_s5), 0  ;;  %p1350_p0 = por %p49_p13, %p48_p12 }
  0x18   : > { %1539 = sst [smem:[#allocation14_spill]] %s1549_s5  ;;  %p1356_p3 = por %p1316_p2, %p48_p12 }
  0x19   : > { %s38_s9 = ssub.s32 %s1243_s16, %s1549_s5  ;;  %p1007_p5 = scmp.lt.s32.totalorder %s1247_s17, 4 }
  0x1a   : > { %p39_p7 = scmp.eq.s32.totalorder %s38_s9, 0  ;;  %s174_s10 = sand.u32 1, %s1235_s14  }
  0x1b   : > { %s787_s11 = sshll.u32 %s174_s10, 7  ;;  %s932_s19 = sshll.u32 %s1243_s16, 7 }
  0x1c   : > { %s1365_s18 = scalar_select %p39_p7, %s1235_s14, %s41_s6  }
  0x1d   : > { %s184_s26 = scalar_lea.hbm %s1527_s0, %s932_s19  ;;  %s178_s28 = scalar_lea.vmem [#allocation2], %s787_s11 }
  0x1e   : > { %s187_s29 = sshll.u32 %s178_s28, 4  ;;  %s185_s30 = sshll.u32 %s184_s26, 4  ;;  %s188_s29 = int_to_ptr.vmem [resolvable:$true] %s187_s29  ;;  %s186_s30 = int_to_ptr.hbm [resolvable:$true] %s185_s30 }
  0x1f   : > { %p999_p9 = pnand %p1007_p5, %p1350_p0  ;;  %s175_s4 = scalar_lea.sflag [#allocation3], %s174_s10 }
  0x20   : > { %s1252_s1 = smov 128   ;;  %s1253_s5 = smov 8  }
  0x21   : > { %1001 = dma.hbm_to_vmem [thread:$0]  (!%p999_p9), %s186_s30, 2048, %s188_s29, %s175_s4, %s1252_s1, %s1252_s1, %s1253_s5  }
  0x22   : > { %199 = sbr.rel (%p1335_p8) target bundleno = 307 (0x133), region = 28  ;;  %s1376_s6 = sand.u32 (!%p1335_p8), 1, %s1231_s13  }
  0x23   : > { %s792_s9 = sshll.u32 (!%p1335_p8), %s1376_s6, 7  ;;  %s202_s11 = scalar_lea.sflag (!%p1335_p8), [#allocation3], %s1376_s6 }
  0x24   : > { %s1380_s19 = scalar_lea.vmem (!%p1335_p8), [#allocation2], %s792_s9 }
  0x27   : > { %1210 = dma.done.wait (%p1322_p4), %s202_s11, 2048  }
  0x28   : > { %1212 = vsyncadd (%p1322_p4), %s202_s11, 4294965248 }
  0x29   : > { %1214 = dma.done.wait (%p1312_p1), [#allocation6], 2048  }
  0x2a   : > { %1216 = vsyncadd (%p1312_p1), [#allocation6], 4294965248  ;;  %s1390_s1 = scalar_lea.vmem [#allocation7], %s792_s9  ;;  %p795_p8 = scmp.ne.s32.totalorder %s1239_s15, 0 }
  0x2c   : > { %239 = sbr.rel (%p795_p8) target bundleno = 51 (0x33), region = 40 }
  0x31   : > { %v1254_v0 = vmov 0.0  }
  0x32   : > { %240 = vst [vmem:[#allocation8] sm:$0x3] %v1254_v0 }
  0x33 PF: > { %v956_v1 = vld [vmem:[#allocation5 + $0x38] sm:$0xff]  ;;  %v955_v3 = vld [vmem:[#allocation5 + $0x30] sm:$0xff]  ;;  %v954_v5 = vld [vmem:[#allocation5 + $0x28] sm:$0xff]  ;;  %s965_s20 = sshll.u32 %s1239_s15, 7  ;;  %s656_s15 = sshll.u32 %s1390_s1, 4  ;;  %s1469_s15 = int_to_ptr.vmem [resolvable:$true] %s656_s15 }
  0x34   : > { %v964_v2 = vld [vmem:[#allocation5 + $0x78] sm:$0xff]  ;;  %465 = vmatpush.bf16.msra.mxu0 %v956_v1  ;;  %v963_v4 = vld [vmem:[#allocation5 + $0x70] sm:$0xff]  ;;  %966 = vmatpush.bf16.msra.mxu2 %v956_v1  ;;  %v962_v6 = vld [vmem:[#allocation5 + $0x68] sm:$0xff]  ;;  %s655_s5 = scalar_lea.hbm %s1529_s2, %s965_s20  ;;  %s643_s10 = scalar_lea.sflag [#allocation4], %s1376_s6 }
  0x35   : > { %514 = vmatpush.bf16.msra.mxu1 %v964_v2  ;;  %974 = vmatpush.bf16.msra.mxu3 %v964_v2  ;;  %v953_v7 = vld [vmem:[#allocation5 + $0x20] sm:$0xff]  ;;  %v952_v9 = vld [vmem:[#allocation5 + $0x18] sm:$0xff]  ;;  %v951_v11 = vld [vmem:[#allocation5 + $0x10] sm:$0xff]  ;;  %s658_s7 = sshll.u32 %s655_s5, 4  ;;  %s1149_s29 = scalar_lea.hbm %s1529_s2, 512  ;;  %s659_s7 = int_to_ptr.hbm [resolvable:$true] %s658_s7 }
  0x36   : > { %v961_v8 = vld [vmem:[#allocation5 + $0x60] sm:$0xff]  ;;  %v960_v10 = vld [vmem:[#allocation5 + $0x58] sm:$0xff]  ;;  %v959_v12 = vld [vmem:[#allocation5 + $0x50] sm:$0xff]  ;;  %s1143_s24 = sshra.s32 %s659_s7, 4  ;;  %s1144_s24 = int_to_ptr.hbm [resolvable:$true] %s1143_s24 }
  0x37   : > { %v950_v13 = vld [vmem:[#allocation5 + $0x8] sm:$0xff]  ;;  %v949_v15 = vld [vmem:[#allocation5] sm:$0xff]  ;;  %v806_v29 = vld [vmem:[%s1380_s19 + $0x10] sm:$0xf]  ;;  %s1145_s25 = scalar_lea.hbm %s1144_s24, 128  ;;  %p1150_p11 = scmp.lt.s32.totalorder %s1144_s24, %s1529_s2 }
  0x38   : > { %466 = vmatpush.bf16.msra.mxu0 %v955_v3  ;;  %967 = vmatpush.bf16.msra.mxu2 %v955_v3  ;;  %v958_v14 = vld [vmem:[#allocation5 + $0x48] sm:$0xff]  ;;  %v957_v16 = vld [vmem:[#allocation5 + $0x40] sm:$0xff]  ;;  %v936_v30 = vld [vmem:[%s1380_s19 + $0x14] sm:$0xf0]  ;;  %p1146_p1 = scmp.ne.s32.totalorder %s1144_s24, %s1145_s25  ;;  %p1151_p12 = scmp.lt.s32.totalorder %s1149_s29, %s1145_s25 }
  0x39   : > { %515 = vmatpush.bf16.msra.mxu1 %v963_v4  ;;  %975 = vmatpush.bf16.msra.mxu3 %v963_v4  ;;  %v798_v17 = vld [vmem:[%s1380_s19] sm:$0xf]  ;;  %v934_v18 = vld [vmem:[%s1380_s19 + $0x4] sm:$0xf0]  ;;  %v933_v19 = vld [vmem:[%s1380_s19 + $0x4] sm:$0xf]  ;;  %v807_v37 = vor.u32 %v936_v30, %v806_v29 }
  0x3a   : > { %v800_v20 = vld [vmem:[%s1380_s19 + $0x8] sm:$0xf0]  ;;  %v830_v21 = vld [vmem:[%s1380_s19 + $0x40] sm:$0xf]  ;;  %v942_v22 = vld [vmem:[%s1380_s19 + $0x44] sm:$0xf0]  ;;  %v799_v25 = vor.u32 %v934_v18, %v798_v17  ;;  %p1147_p4 = pnand %p1146_p1, %p1356_p3  ;;  %p1152_p13 = por %p1151_p12, %p1150_p11 }
  0x3b   : > { %v941_v23 = vld [vmem:[%s1380_s19 + $0x44] sm:$0xf]  ;;  %v832_v24 = vld [vmem:[%s1380_s19 + $0x48] sm:$0xf0]  ;;  %v803_v26 = vor.u32 %v933_v19, %v800_v20  ;;  %v831_v27 = vor.u32 %v942_v22, %v830_v21  ;;  %v935_v31 = vld [vmem:[%s1380_s19 + $0x14] sm:$0xf] }
  0x3c   : > { %467 = vmatpush.bf16.msra.mxu0 %v954_v5  ;;  %968 = vmatpush.bf16.msra.mxu2 %v954_v5  ;;  %v835_v28 = vor.u32 %v941_v23, %v832_v24  ;;  %v808_v32 = vld [vmem:[%s1380_s19 + $0x18] sm:$0xf0]  ;;  %v838_v33 = vld [vmem:[%s1380_s19 + $0x50] sm:$0xf]  ;;  %v944_v34 = vld [vmem:[%s1380_s19 + $0x54] sm:$0xf0]  ;;  %p1148_p10 = pneg %p1147_p4 }
  0x3d   : > { %516 = vmatpush.bf16.msra.mxu1 %v962_v6  ;;  %976 = vmatpush.bf16.msra.mxu3 %v962_v6  ;;  %v943_v35 = vld [vmem:[%s1380_s19 + $0x54] sm:$0xf]  ;;  %v840_v36 = vld [vmem:[%s1380_s19 + $0x58] sm:$0xf0]  ;;  %v811_v38 = vor.u32 %v935_v31, %v808_v32  ;;  %v839_v39 = vor.u32 %v944_v34, %v838_v33  ;;  %v814_v41 = vld [vmem:[%s1380_s19 + $0x20] sm:$0xf] }
  0x3e   : > { %v843_v40 = vor.u32 %v943_v35, %v840_v36  ;;  %v938_v42 = vld [vmem:[%s1380_s19 + $0x24] sm:$0xf0]  ;;  %v937_v43 = vld [vmem:[%s1380_s19 + $0x24] sm:$0xf]  ;;  %v816_v44 = vld [vmem:[%s1380_s19 + $0x28] sm:$0xf0]  ;;  %p1153_p0 = pnand %p1152_p13, %p1148_p10 }
  0x3f   : > { %v846_v45 = vld [vmem:[%s1380_s19 + $0x60] sm:$0xf]  ;;  %v946_v46 = vld [vmem:[%s1380_s19 + $0x64] sm:$0xf0]  ;;  %v945_v47 = vld [vmem:[%s1380_s19 + $0x64] sm:$0xf]  ;;  %v815_v49 = vor.u32 %v938_v42, %v814_v41  ;;  %v819_v50 = vor.u32 %v937_v43, %v816_v44 }
  0x40   : > { %468 = vmatpush.bf16.msra.mxu0 %v953_v7  ;;  %969 = vmatpush.bf16.msra.mxu2 %v953_v7  ;;  %v848_v48 = vld [vmem:[%s1380_s19 + $0x68] sm:$0xf0]  ;;  %v847_v51 = vor.u32 %v946_v46, %v846_v45  ;;  %v822_v53 = vld [vmem:[%s1380_s19 + $0x30] sm:$0xf]  ;;  %v940_v54 = vld [vmem:[%s1380_s19 + $0x34] sm:$0xf0] }
  0x41   : > { %517 = vmatpush.bf16.msra.mxu1 %v961_v8  ;;  %977 = vmatpush.bf16.msra.mxu3 %v961_v8  ;;  %v851_v52 = vor.u32 %v945_v47, %v848_v48  ;;  %v939_v55 = vld [vmem:[%s1380_s19 + $0x34] sm:$0xf]  ;;  %v824_v56 = vld [vmem:[%s1380_s19 + $0x38] sm:$0xf0]  ;;  %v854_v57 = vld [vmem:[%s1380_s19 + $0x70] sm:$0xf]  ;;  %v823_v61 = vor.u32 %v940_v54, %v822_v53 }
  0x42   : > { %v948_v58 = vld [vmem:[%s1380_s19 + $0x74] sm:$0xf0]  ;;  %v947_v59 = vld [vmem:[%s1380_s19 + $0x74] sm:$0xf]  ;;  %v856_v60 = vld [vmem:[%s1380_s19 + $0x78] sm:$0xf0]  ;;  %v827_v62 = vor.u32 %v939_v55, %v824_v56 }
  0x43   : > { %v855_v63 = vor.u32 %v948_v58, %v854_v57  ;;  %v859_v0 = vor.u32 %v947_v59, %v856_v60 }
  0x44   : > { %469 = vmatpush.bf16.msra.mxu0 %v952_v9  ;;  %970 = vmatpush.bf16.msra.mxu2 %v952_v9 }
  0x45   : > { %518 = vmatpush.bf16.msra.mxu1 %v960_v10  ;;  %978 = vmatpush.bf16.msra.mxu3 %v960_v10 }
  0x48   : > { %470 = vmatpush.bf16.msra.mxu0 %v951_v11  ;;  %971 = vmatpush.bf16.msra.mxu2 %v951_v11 }
  0x49   : > { %519 = vmatpush.bf16.msra.mxu1 %v959_v12  ;;  %979 = vmatpush.bf16.msra.mxu3 %v959_v12 }
  0x4c   : > { %471 = vmatpush.bf16.msra.mxu0 %v950_v13  ;;  %972 = vmatpush.bf16.msra.mxu2 %v950_v13 }
  0x4d   : > { %520 = vmatpush.bf16.msra.mxu1 %v958_v14  ;;  %980 = vmatpush.bf16.msra.mxu3 %v958_v14 }
  0x50   : > { %472 = vmatpush.bf16.msra.mxu0 %v949_v15  ;;  %973 = vmatpush.bf16.msra.mxu2 %v949_v15 }
  0x51   : > { %521 = vmatpush.bf16.msra.mxu1 %v957_v16  ;;  %981 = vmatpush.bf16.msra.mxu3 %v957_v16 }
  0x53   : > { %473 = vmatmul.bf16.vlgmr.msra.gmra.mxu0 %v799_v25  ;;  %493 = vmatmul.bf16.vlgmr.msra.gmra.mxu2 %v831_v27 }
  0x54   : > { %522 = vmatmul.bf16.vlgmr.msra.gmra.mxu1 %v803_v26  ;;  %542 = vmatmul.bf16.vlgmr.msra.gmra.mxu3 %v835_v28 }
  0x63   : > { %478 = vmatmul.bf16.gmra.mxu0 %v807_v37  ;;  %498 = vmatmul.bf16.gmra.mxu2 %v839_v39 }
  0x64   : > { %527 = vmatmul.bf16.gmra.mxu1 %v811_v38  ;;  %547 = vmatmul.bf16.gmra.mxu3 %v843_v40 }
  0x73   : > { %483 = vmatmul.bf16.gmra.mxu0 %v815_v49  ;;  %503 = vmatmul.bf16.gmra.mxu2 %v847_v51 }
  0x74   : > { %532 = vmatmul.bf16.gmra.mxu1 %v819_v50  ;;  %552 = vmatmul.bf16.gmra.mxu3 %v851_v52 }
  0x83   : > { %488 = vmatmul.bf16.gmra.mxu0 %v823_v61  ;;  %508 = vmatmul.bf16.gmra.mxu2 %v855_v63 }
  0x84   : > { %537 = vmatmul.bf16.gmra.mxu1 %v827_v62  ;;  %557 = vmatmul.bf16.gmra.mxu3 %v859_v0 }
  0xd0   : > { %v474_v1 = vpop.f32.mrf.mxu0 }
  0xd1   : > { %v523_v2 = vpop.f32.mrf.mxu1 }
  0xd2   : > { %v524_v3 = vadd.f32 %v523_v2, %v474_v1 }
  0xd4   : > { %563 = vst [vmem:[%s1390_s1] sm:$0xff] %v524_v3  ;;  %v600_v35 = vmul.f32 %v524_v3, %v524_v3 }
  0xd6   : > { %v494_v4 = vpop.f32.mrf.mxu2 }
  0xd7   : > { %v543_v5 = vpop.f32.mrf.mxu3 }
  0xd8   : > { %v476_v6 = vpop.f32.mrf.mxu0  ;;  %v1426_v8 = vadd.f32 %v543_v5, %v494_v4 }
  0xd9   : > { %v525_v7 = vpop.f32.mrf.mxu1 }
  0xda   : > { %v526_v9 = vadd.f32 %v525_v7, %v476_v6  ;;  %571 = vst [vmem:[%s1390_s1 + $0x40] sm:$0xff] %v1426_v8 }
  0xdc   : > { %564 = vst [vmem:[%s1390_s1 + $0x8] sm:$0xff] %v526_v9  ;;  %v601_v34 = vmul.f32 %v526_v9, %v526_v9  ;;  %v579_v36 = vadd.f32 %v526_v9, %v524_v3  ;;  %v608_v3 = vmul.f32 %v1426_v8, %v1426_v8 }
  0xde   : > { %v496_v10 = vpop.f32.mrf.mxu2  ;;  %v616_v43 = vadd.f32 %v601_v34, %v600_v35 }
  0xdf   : > { %v545_v11 = vpop.f32.mrf.mxu3 }
  0xe0   : > { %v479_v12 = vpop.f32.mrf.mxu0  ;;  %v1431_v14 = vadd.f32 %v545_v11, %v496_v10 }
  0xe1   : > { %v528_v13 = vpop.f32.mrf.mxu1 }
  0xe2   : > { %v529_v15 = vadd.f32 %v528_v13, %v479_v12  ;;  %572 = vst [vmem:[%s1390_s1 + $0x48] sm:$0xff] %v1431_v14  ;;  %v609_v6 = vmul.f32 %v1431_v14, %v1431_v14 }
  0xe4   : > { %565 = vst [vmem:[%s1390_s1 + $0x10] sm:$0xff] %v529_v15  ;;  %v602_v37 = vmul.f32 %v529_v15, %v529_v15  ;;  %v580_v44 = vadd.f32 %v579_v36, %v529_v15 }
  0xe6   : > { %v499_v16 = vpop.f32.mrf.mxu2  ;;  %v617_v47 = vadd.f32 %v616_v43, %v602_v37 }
  0xe7   : > { %v548_v17 = vpop.f32.mrf.mxu3 }
  0xe8   : > { %v481_v18 = vpop.f32.mrf.mxu0  ;;  %v1436_v20 = vadd.f32 %v548_v17, %v499_v16 }
  0xe9   : > { %v530_v19 = vpop.f32.mrf.mxu1 }
  0xea   : > { %v531_v21 = vadd.f32 %v530_v19, %v481_v18  ;;  %573 = vst [vmem:[%s1390_s1 + $0x50] sm:$0xff] %v1436_v20  ;;  %v610_v13 = vmul.f32 %v1436_v20, %v1436_v20 }
  0xec   : > { %566 = vst [vmem:[%s1390_s1 + $0x18] sm:$0xff] %v531_v21  ;;  %v603_v45 = vmul.f32 %v531_v21, %v531_v21  ;;  %v581_v48 = vadd.f32 %v580_v44, %v531_v21 }
  0xee   : > { %v501_v22 = vpop.f32.mrf.mxu2  ;;  %v618_v50 = vadd.f32 %v617_v47, %v603_v45 }
  0xef   : > { %v550_v23 = vpop.f32.mrf.mxu3 }
  0xf0   : > { %v484_v24 = vpop.f32.mrf.mxu0  ;;  %v1441_v26 = vadd.f32 %v550_v23, %v501_v22 }
  0xf1   : > { %v533_v25 = vpop.f32.mrf.mxu1 }
  0xf2   : > { %v534_v27 = vadd.f32 %v533_v25, %v484_v24  ;;  %574 = vst [vmem:[%s1390_s1 + $0x58] sm:$0xff] %v1441_v26  ;;  %v611_v16 = vmul.f32 %v1441_v26, %v1441_v26 }
  0xf4   : > { %567 = vst [vmem:[%s1390_s1 + $0x20] sm:$0xff] %v534_v27  ;;  %v604_v49 = vmul.f32 %v534_v27, %v534_v27  ;;  %v582_v51 = vadd.f32 %v581_v48, %v534_v27 }
  0xf6   : > { %v504_v28 = vpop.f32.mrf.mxu2  ;;  %v619_v53 = vadd.f32 %v618_v50, %v604_v49 }
  0xf7   : > { %v553_v29 = vpop.f32.mrf.mxu3 }
  0xf8   : > { %v486_v30 = vpop.f32.mrf.mxu0  ;;  %v1446_v32 = vadd.f32 %v553_v29, %v504_v28 }
  0xf9   : > { %v535_v31 = vpop.f32.mrf.mxu1 }
  0xfa   : > { %v536_v33 = vadd.f32 %v535_v31, %v486_v30  ;;  %575 = vst [vmem:[%s1390_s1 + $0x60] sm:$0xff] %v1446_v32 }
  0xfc   : > { %568 = vst [vmem:[%s1390_s1 + $0x28] sm:$0xff] %v536_v33  ;;  %v605_v52 = vmul.f32 %v536_v33, %v536_v33  ;;  %v583_v54 = vadd.f32 %v582_v51, %v536_v33 }
  0xfe   : > { %v506_v38 = vpop.f32.mrf.mxu2  ;;  %v620_v61 = vadd.f32 %v619_v53, %v605_v52 }
  0xff   : > { %v555_v39 = vpop.f32.mrf.mxu3 }
 0x100   : > { %v489_v40 = vpop.f32.mrf.mxu0  ;;  %v1451_v42 = vadd.f32 %v555_v39, %v506_v38 }
 0x101   : > { %v538_v41 = vpop.f32.mrf.mxu1 }
 0x102   : > { %v539_v46 = vadd.f32 %v538_v41, %v489_v40  ;;  %576 = vst [vmem:[%s1390_s1 + $0x68] sm:$0xff] %v1451_v42 }
 0x104   : > { %569 = vst [vmem:[%s1390_s1 + $0x30] sm:$0xff] %v539_v46  ;;  %v606_v55 = vmul.f32 %v539_v46, %v539_v46  ;;  %v584_v62 = vadd.f32 %v583_v54, %v539_v46 }
 0x106   : > { %v509_v56 = vpop.f32.mrf.mxu2  ;;  %v621_v0 = vadd.f32 %v620_v61, %v606_v55 }
 0x107   : > { %v558_v57 = vpop.f32.mrf.mxu3 }
 0x108   : > { %v491_v58 = vpop.f32.mrf.mxu0  ;;  %v559_v60 = vadd.f32 %v558_v57, %v509_v56 }
 0x109   : > { %v540_v59 = vpop.f32.mrf.mxu1 }
 0x10a   : > { %v541_v63 = vadd.f32 %v540_v59, %v491_v58  ;;  %577 = vst [vmem:[%s1390_s1 + $0x70] sm:$0xff] %v559_v60 }
 0x10c   : > { %570 = vst [vmem:[%s1390_s1 + $0x38] sm:$0xff] %v541_v63  ;;  %v585_v1 = vadd.f32 %v584_v62, %v541_v63  ;;  %v607_v2 = vmul.f32 %v541_v63, %v541_v63 }
 0x10e   : > { %v586_v4 = vadd.f32 %v585_v1, %v1426_v8  ;;  %v622_v5 = vadd.f32 %v621_v0, %v607_v2  ;;  %v511_v10 = vpop.f32.mrf.mxu2 }
 0x10f   : > { %v560_v11 = vpop.f32.mrf.mxu3 }
 0x110   : > { %v587_v7 = vadd.f32 %v586_v4, %v1431_v14  ;;  %v623_v9 = vadd.f32 %v622_v5, %v608_v3  ;;  %v561_v12 = vadd.f32 %v560_v11, %v511_v10 }
 0x112   : > { %v588_v8 = vadd.f32 %v587_v7, %v1436_v20  ;;  %v624_v15 = vadd.f32 %v623_v9, %v609_v6  ;;  %578 = vst [vmem:[%s1390_s1 + $0x78] sm:$0xff] %v561_v12 }
 0x114   : > { %v625_v17 = vadd.f32 %v624_v15, %v610_v13  ;;  %v589_v14 = vadd.f32 %v588_v8, %v1441_v26 }
 0x115   : > { %1156 = shalt.err (!%p1153_p0)
}
 0x116   : > { %s1255_s6 = smov 128   ;;  %s1256_s9 = smov 8   ;;  %v612_v18 = vmul.f32 %v1446_v32, %v1446_v32  ;;  %v590_v19 = vadd.f32 %v589_v14, %v1446_v32  ;;  %v626_v20 = vadd.f32 %v625_v17, %v611_v16  ;;  %v613_v21 = vmul.f32 %v1451_v42, %v1451_v42  ;;  %v637_v43 = vld [vmem:[#allocation8] sm:$0x3] }
 0x117   : > { %988 = dma.vmem_to_hbm [thread:$0]  (%p1356_p3), %s1469_s15, 2048, %s659_s7, %s643_s10, %s1255_s6, %s1255_s6, %s1256_s9   ;;  %v614_v25 = vmul.f32 %v559_v60, %v559_v60  ;;  %v615_v29 = vmul.f32 %v561_v12, %v561_v12  ;;  %vm638_vm0 = vcmask 1040384  }
 0x118   : > { %v591_v22 = vadd.f32 %v590_v19, %v1451_v42  ;;  %v627_v23 = vadd.f32 %v626_v20, %v612_v18  ;;  %s1257_s8 = smov [#allocation8]   ;;  %s675_s20 = sshll.u32 %s1530_s3, 4  ;;  %s676_s20 = int_to_ptr.hbm [resolvable:$true] %s675_s20 }
 0x119   : > { %s673_s11 = sshll.u32 %s1257_s8, 4  ;;  %s674_s11 = int_to_ptr.vmem [resolvable:$true] %s673_s11 }
 0x11a   : > { %v592_v24 = vadd.f32 %v591_v22, %v559_v60  ;;  %v628_v26 = vadd.f32 %v627_v23, %v613_v21 }
 0x11c   : > { %v629_v27 = vadd.f32 %v628_v26, %v614_v25  ;;  %v593_v28 = vadd.f32 %v592_v24, %v561_v12 }
 0x11e   : > { %v594_v30 = vrot.slane %v593_v28, 4  ;;  %v630_v31 = vadd.f32 %v629_v27, %v615_v29 }
 0x120   : > { %v595_v33 = vadd.f32 %v594_v30, %v593_v28  ;;  %v631_v34 = vrot.slane %v630_v31, 4 }
 0x122   : > { %v596_v35 = vrot.slane %v595_v33, 2  ;;  %v632_v36 = vadd.f32 %v631_v34, %v630_v31 }
 0x124   : > { %v597_v32 = vadd.f32 %v596_v35, %v595_v33  ;;  %v633_v37 = vrot.slane %v632_v36, 2 }
 0x126   : > { %v598_v38 = vrot.slane %v597_v32, 1  ;;  %v634_v39 = vadd.f32 %v633_v37, %v632_v36 }
 0x128   : > { %v635_v40 = vrot.slane %v634_v39, 1  ;;  %v599_v41 = vadd.f32 %v598_v38, %v597_v32 }
 0x12a   : > { %v636_v42 = vadd.f32 %v635_v40, %v634_v39 }
 0x12c   : > { %v639_v44 = vsel %vm638_vm0, %v599_v41, %v636_v42 }
 0x12d   : > { %v640_v45 = vadd.f32 %v639_v44, %v637_v43 }
 0x12f   : > { %641 = vst [vmem:[#allocation8] sm:$0x3] %v640_v45 }
 0x130   : > { %990 = dma.vmem_to_hbm [thread:$0]  (%p1316_p2), %s674_s11, 32, %s676_s20, [#allocation9]  }
 0x131   : > { %1218 = dma.done.wait (%p1316_p2), [#allocation9], 32  }
 0x132   : > { %1220 = vsyncadd (%p1316_p2), [#allocation9], 4294967264 }
 0x133 PF: > { %p1011_p3 = scmp.ge.s32.totalorder %s1247_s17, 2  ;;  %s692_s22 = sand.u32 1, %s1227_s12  }
 0x134   : > { %s693_s27 = scalar_lea.sflag [#allocation4], %s692_s22 }
 0x135   : > { %p1003_p5 = pnand %p1011_p3, %p1327_p6 }
 0x137   : > { %p1004_p7 = pneg %p1003_p5 }
 0x139   : > { %1222 = dma.done.wait (%p1004_p7), %s693_s27, 2048  }
 0x13a   : > { %1224 = vsyncadd (%p1004_p7), %s693_s27, 4294965248  ;;  %s22_s17 = sadd.s32 1, %s1247_s17   ;;  %s1542_s21 = sld [smem:[#allocation14_spill]] }
 0x13b   : > { %p19_p9 = scmp.ge.s32.totalorder %s22_s17, 6   ;;  %s1543_s12 = smov %s1231_s13 }
 0x13c   : > { %s1544_s13 = smov %s1235_s14  ;;  %s1545_s14 = smov %s1365_s18 }
 0x13d   : > { %s1546_s15 = smov %s1243_s16  ;;  %21 = sbr.rel (!%p19_p9) target bundleno = 10 (0xa), region = 91 }
 0x140   : > { %s1547_s16 = smov %s1542_s21 }
 0x142   :  { %699 = vsyncpa [#allocation3], 1 }
 0x143   :  { %701 = vsyncpa [#allocation3 + $0x1], 1 }
 0x144   :  { %702 = vsyncpa [#allocation6], 1 }
 0x145   :  { %703 = vsyncpa [#allocation4], 1 }
 0x146   :  { %705 = vsyncpa [#allocation4 + $0x1], 1 }
 0x147   :  { %706 = vsyncpa [#allocation9], 1 }

</bundles_post_ra>
